<compile_context>
chip_gen: v7x
topology: tpu7x:2x2x1
jax: 0.10.0
libtpu: 0.0.40
codegen_flags: <defaults>
</compile_context>

<pallas_src>
import functools

import jax
import jax.numpy as jnp
from jax.experimental import pallas as pl
from jax.experimental.pallas import tpu as pltpu


def _round_up(x, m):
    return (x + m - 1) // m * m


def _pick_tile(dim, candidates):
    for c in candidates:
        if dim % c == 0:
            return c
    return dim


# ---------------------------------------------------------------------------
# Kernel 1: relation-stacked feature transform (hoisted out of the A matmul).
#   XWn[r*N + i]  = (X @ Wneigh_r)[i]                     (bf16, re-feeds MXU)
#   XSelf         = X @ mean_r(Wself_r) + mean_r(b_r)     (f32, added at finalize)
# ---------------------------------------------------------------------------
def _xw_kernel(x_ref, wn_ref, ws_ref, b_ref, xwn_ref, xself_ref):
    rel = pl.program_id(1)
    x = x_ref[...]
    xwn_ref[...] = jnp.dot(
        x, wn_ref[...], preferred_element_type=jnp.float32
    ).astype(xwn_ref.dtype)

    @pl.when(rel == 0)
    def _():
        xself_ref[...] = (
            jnp.dot(x, ws_ref[...], preferred_element_type=jnp.float32) + b_ref[...]
        )


def _relation_transform(x_bf16, wn_bf16, ws_mean_bf16, b_mean_f32, *, tile_m):
    n_pad, fin_pad = x_bf16.shape
    num_rel, _, fout_pad = wn_bf16.shape
    grid_m = n_pad // tile_m

    return pl.pallas_call(
        _xw_kernel,
        out_shape=(
            jax.ShapeDtypeStruct((num_rel * n_pad, fout_pad), jnp.bfloat16),  # XWn
            jax.ShapeDtypeStruct((n_pad, fout_pad), jnp.float32),             # XSelf
        ),
        grid_spec=pltpu.PrefetchScalarGridSpec(
            num_scalar_prefetch=0,
            grid=(grid_m, num_rel),
            in_specs=[
                pl.BlockSpec((tile_m, fin_pad), lambda i, j: (i, 0)),          # X tile
                pl.BlockSpec((pl.Squeezed(), fin_pad, fout_pad),
                             lambda i, j: (j, 0, 0)),                          # Wneigh_r
                pl.BlockSpec((fin_pad, fout_pad), lambda i, j: (0, 0)),        # Wself_mean
                pl.BlockSpec((1, fout_pad), lambda i, j: (0, 0)),              # b_mean
            ],
            out_specs=[
                # relation-stacked rows: block row index = j * grid_m + i
                pl.BlockSpec((tile_m, fout_pad), lambda i, j: (j * grid_m + i, 0)),
                pl.BlockSpec((tile_m, fout_pad), lambda i, j: (i, 0)),
            ],
        ),
        compiler_params=pltpu.CompilerParams(
            dimension_semantics=("parallel", "arbitrary")),
    )(x_bf16, wn_bf16, ws_mean_bf16, b_mean_f32)


# ---------------------------------------------------------------------------
# Kernel 2: fused long-K aggregation  out = A_cat @ XWn + XSelf  (+ relu).
# Grid = (dst tiles [parallel], K tiles [arbitrary, last]); the f32 output
# block itself is the accumulator (revisited across the K axis).
# ---------------------------------------------------------------------------
def _agg_kernel(a_ref, xw_ref, xself_ref, o_ref, *, apply_relu):
    k = pl.program_id(1)

    @pl.when(k == 0)
    def _():
        o_ref[...] = xself_ref[...]

    o_ref[...] += jnp.dot(a_ref[...], xw_ref[...],
                          preferred_element_type=jnp.float32)

    if apply_relu:
        @pl.when(k == pl.num_programs(1) - 1)
        def _():
            o_ref[...] = jnp.maximum(o_ref[...], 0.0)


def _aggregate(a_cat_bf16, xwn_bf16, xself_f32, *, tile_m, tile_k, apply_relu):
    n_pad, k_pad = a_cat_bf16.shape
    fout_pad = xwn_bf16.shape[1]
    grid_m = n_pad // tile_m
    grid_k = k_pad // tile_k

    # double-buffered tile footprint (A + XWn bf16, XSelf + out f32)
    est_vmem = (2 * tile_m * tile_k * 2
                + 2 * tile_k * fout_pad * 2
                + 2 * tile_m * fout_pad * 4
                + 2 * tile_m * fout_pad * 4)
    vmem_limit = int(min(64 * 1024 * 1024, max(2 * est_vmem, 32 * 1024 * 1024)))

    cost = pl.CostEstimate(
        flops=2 * n_pad * k_pad * fout_pad,
        transcendentals=0,
        bytes_accessed=(a_cat_bf16.size * 2 + xwn_bf16.size * 2
                        + xself_f32.size * 4 + n_pad * fout_pad * 4),
    )

    kernel = functools.partial(_agg_kernel, apply_relu=apply_relu)
    return pl.pallas_call(
        kernel,
        out_shape=jax.ShapeDtypeStruct((n_pad, fout_pad), jnp.float32),
        grid_spec=pltpu.PrefetchScalarGridSpec(
            num_scalar_prefetch=0,
            grid=(grid_m, grid_k),
            in_specs=[
                pl.BlockSpec((tile_m, tile_k), lambda i, k: (i, k)),       # A_cat tile
                pl.BlockSpec((tile_k, fout_pad), lambda i, k: (k, 0)),     # XWn K tile
                pl.BlockSpec((tile_m, fout_pad), lambda i, k: (i, 0)),     # XSelf (resident)
            ],
            out_specs=pl.BlockSpec((tile_m, fout_pad), lambda i, k: (i, 0)),
        ),
        compiler_params=pltpu.CompilerParams(
            dimension_semantics=("parallel", "arbitrary"),
            vmem_limit_bytes=vmem_limit),
        cost_estimate=cost,
    )(a_cat_bf16, xwn_bf16, xself_f32)


# ---------------------------------------------------------------------------
# Layer / forward wrappers (padding + dtype glue only).
# ---------------------------------------------------------------------------
def _sage_layer(a_cat_bf16, x_rows_padded, w_neigh, w_self, bias,
                *, tile_m, tile_k, apply_relu):
    num_rel, fin, fout = w_neigh.shape
    fin_pad = _round_up(fin, 128)
    fout_pad = _round_up(fout, 128)

    # lane-dense zero padding (exact no-op for the math)
    x_p = jnp.pad(x_rows_padded,
                  ((0, 0), (0, fin_pad - x_rows_padded.shape[1]))).astype(jnp.bfloat16)
    wn_p = jnp.pad(w_neigh,
                   ((0, 0), (0, fin_pad - fin), (0, fout_pad - fout))).astype(jnp.bfloat16)
    # self weights / biases pre-averaged over relations (hoisted out of the kernel)
    ws_mean = jnp.pad(jnp.mean(w_self, axis=0),
                      ((0, fin_pad - fin), (0, fout_pad - fout))).astype(jnp.bfloat16)
    b_mean = jnp.pad(jnp.mean(bias, axis=0), (0, fout_pad - fout))
    b_mean = b_mean.reshape(1, fout_pad).astype(jnp.float32)

    xwn, xself = _relation_transform(x_p, wn_p, ws_mean, b_mean, tile_m=tile_m)
    return _aggregate(a_cat_bf16, xwn, xself,
                      tile_m=tile_m, tile_k=tile_k, apply_relu=apply_relu)


def heterosage_forward(adj, x, params):
    """adj: [R, N_dst, N_src] dense per-relation adjacency; x: [N, Fin]."""
    num_rel, n, _ = adj.shape
    n_pad = _round_up(n, 128)
    tile_m = 256 if n_pad % 256 == 0 else 128
    k_pad = num_rel * n_pad
    tile_k = k_pad if k_pad <= 1024 else _pick_tile(k_pad, (512, 256, 128))

    # Fold SAGE 'mean' neighbour aggregation AND the HeteroGraphConv 'mean'
    # over relations into the adjacency:  A_r / (R * in_deg_r).
    deg = jnp.clip(adj.sum(axis=-1, keepdims=True), 1.0, None)
    a_scaled = adj / (deg * num_rel)
    a_scaled = jnp.pad(a_scaled, ((0, 0), (0, n_pad - n), (0, n_pad - n)))
    # concat relations along src -> one long-K contraction per layer
    a_cat = jnp.transpose(a_scaled, (1, 0, 2)).reshape(n_pad, k_pad).astype(jnp.bfloat16)

    x_rows = jnp.pad(x, ((0, n_pad - n), (0, 0)))

    h = _sage_layer(a_cat, x_rows, params["w_neigh1"], params["w_self1"], params["b1"],
                    tile_m=tile_m, tile_k=tile_k, apply_relu=True)
    out = _sage_layer(a_cat, h, params["w_neigh2"], params["w_self2"], params["b2"],
                      tile_m=tile_m, tile_k=tile_k, apply_relu=False)

    fout = params["w_neigh2"].shape[2]
    return out[:n, :fout]


def heterosage_reference(adj, x, params):
    """Pure-JAX per-relation reference mirroring the kernel's bf16-on-MXU /
    f32-accumulate numerics (unfused, unpadded)."""
    num_rel = adj.shape[0]
    deg = jnp.clip(adj.sum(axis=-1, keepdims=True), 1.0, None)
    a = ((adj / deg) / num_rel).astype(jnp.bfloat16)

    def layer(feat, w_neigh, w_self, bias):
        xb = feat.astype(jnp.bfloat16)
        acc = jnp.dot(xb, jnp.mean(w_self, axis=0).astype(jnp.bfloat16),
                      preferred_element_type=jnp.float32) + jnp.mean(bias, axis=0)
        for r in range(num_rel):
            xw = jnp.dot(xb, w_neigh[r].astype(jnp.bfloat16),
                         preferred_element_type=jnp.float32).astype(jnp.bfloat16)
            acc = acc + jnp.dot(a[r], xw, preferred_element_type=jnp.float32)
        return acc

    h = jnp.maximum(layer(x, params["w_neigh1"], params["w_self1"], params["b1"]), 0.0)
    return layer(h, params["w_neigh2"], params["w_self2"], params["b2"])


if __name__ == "__main__":
    # Small deterministic problem consistent with the module:
    # N=16 nodes (single node type), R=3 relations,
    # in_feats=4, hidden_feats=32, out_feats=8.
    N, R = 16, 3
    in_feats, hidden_feats, out_feats = 4, 32, 8

    key = jax.random.PRNGKey(0)
    k_adj, k_x, k1, k2, k3, k4, k5, k6 = jax.random.split(key, 8)

    # Dense per-relation adjacency [R, N_dst, N_src]; self-loops keep every
    # in-degree nonzero (as DGL SAGEConv requires).
    adj = (jax.random.uniform(k_adj, (R, N, N)) < 0.35).astype(jnp.float32)
    adj = jnp.maximum(adj, jnp.eye(N, dtype=jnp.float32)[None])

    x = jax.random.normal(k_x, (N, in_feats), dtype=jnp.float32)

    params = {
        "w_neigh1": jax.random.normal(k1, (R, in_feats, hidden_feats), jnp.float32)
                    * (1.0 / jnp.sqrt(in_feats)),
        "w_self1": jax.random.normal(k2, (R, in_feats, hidden_feats), jnp.float32)
                   * (1.0 / jnp.sqrt(in_feats)),
        "b1": jax.random.normal(k3, (R, hidden_feats), jnp.float32) * 0.1,
        "w_neigh2": jax.random.normal(k4, (R, hidden_feats, out_feats), jnp.float32)
                    * (1.0 / jnp.sqrt(hidden_feats)),
        "w_self2": jax.random.normal(k5, (R, hidden_feats, out_feats), jnp.float32)
                   * (1.0 / jnp.sqrt(hidden_feats)),
        "b2": jax.random.normal(k6, (R, out_feats), jnp.float32) * 0.1,
    }

    out = jax.block_until_ready(jax.jit(heterosage_forward)(adj, x, params))
    ref = jax.block_until_ready(heterosage_reference(adj, x, params))

    assert out.shape == (N, out_feats), out.shape
    max_err = jnp.max(jnp.abs(out - ref))
    assert jnp.allclose(out, ref, rtol=1e-2, atol=1e-2), f"max abs err {max_err}"
    print("KERNEL_OK")
</pallas_src>

<mosaic_0001>
module attributes {stable_mosaic.version = 11 : i64} {
  func.func @_xw_kernel(%arg0: i32, %arg1: i32, %arg2: memref<128x128xbf16, #tpu.memory_space<vmem>>, %arg3: memref<1x128x128xbf16, #tpu.memory_space<vmem>>, %arg4: memref<128x128xbf16, #tpu.memory_space<vmem>>, %arg5: memref<1x128xf32, #tpu.memory_space<vmem>>, %arg6: memref<128x128xbf16, #tpu.memory_space<vmem>>, %arg7: memref<128x128xf32, #tpu.memory_space<vmem>>) attributes {dimension_semantics = [#tpu.dimension_semantics<parallel>, #tpu.dimension_semantics<arbitrary>], iteration_bounds = array<i64: 1, 3>, scalar_prefetch = 0 : i64, scratch_operands = 0 : i64, tpu.core_type = #tpu.core_type<tc>, window_params = [{transform_indices = @transform_0, window_bounds = array<i64: 128, 128>}, {transform_indices = @transform_1, window_bounds = array<i64: 1, 128, 128>}, {pipeline_mode = #tpu.pipeline_mode<synchronous>, transform_indices = @transform_2, window_bounds = array<i64: 128, 128>}, {pipeline_mode = #tpu.pipeline_mode<synchronous>, transform_indices = @transform_3, window_bounds = array<i64: 1, 128>}, {transform_indices = @transform_4, window_bounds = array<i64: 128, 128>}, {transform_indices = @transform_5, window_bounds = array<i64: 128, 128>}]} {
    %c0 = arith.constant 0 : index
    %c0_0 = arith.constant 0 : index
    %0 = vector.load %arg2[%c0, %c0_0] : memref<128x128xbf16, #tpu.memory_space<vmem>>, vector<128x128xbf16>
    %c0_1 = arith.constant 0 : index
    %c0_2 = arith.constant 0 : index
    %c0_3 = arith.constant 0 : index
    %1 = vector.load %arg3[%c0_1, %c0_2, %c0_3] : memref<1x128x128xbf16, #tpu.memory_space<vmem>>, vector<1x128x128xbf16>
    %2 = vector.shape_cast %1 : vector<1x128x128xbf16> to vector<128x128xbf16>
    %cst = arith.constant dense<0.000000e+00> : vector<128x128xf32>
    %3 = tpu.matmul %0, %2, %cst {dimension_numbers = #tpu.dot_dimension_numbers<[1], [0], [0], [1], [0, 0, 1, 1], [], []>} : vector<128x128xbf16>, vector<128x128xbf16>, vector<128x128xf32> -> vector<128x128xf32>
    %4 = arith.truncf %3 : vector<128x128xf32> to vector<128x128xbf16>
    %c0_4 = arith.constant 0 : index
    %c0_5 = arith.constant 0 : index
    %5 = vector.load %arg6[%c0_4, %c0_5] : memref<128x128xbf16, #tpu.memory_space<vmem>>, vector<128x128xbf16>
    tpu.vector_store %arg6[%c0_4, %c0_5], %4 {strides = array<i32>} : memref<128x128xbf16, #tpu.memory_space<vmem>>, vector<128x128xbf16>,
    %c0_i32 = arith.constant 0 : i32
    %6 = arith.cmpi eq, %arg1, %c0_i32 : i32
    %7 = arith.extui %6 : i1 to i32
    %c0_i32_6 = arith.constant 0 : i32
    %8 = arith.cmpi ne, %7, %c0_i32_6 : i32
    scf.if %8 {
      %c0_7 = arith.constant 0 : index
      %c0_8 = arith.constant 0 : index
      %9 = vector.load %arg4[%c0_7, %c0_8] : memref<128x128xbf16, #tpu.memory_space<vmem>>, vector<128x128xbf16>
      %cst_9 = arith.constant dense<0.000000e+00> : vector<128x128xf32>
      %10 = tpu.matmul %0, %9, %cst_9 {dimension_numbers = #tpu.dot_dimension_numbers<[1], [0], [0], [1], [0, 0, 1, 1], [], []>} : vector<128x128xbf16>, vector<128x128xbf16>, vector<128x128xf32> -> vector<128x128xf32>
      %c0_10 = arith.constant 0 : index
      %c0_11 = arith.constant 0 : index
      %11 = vector.load %arg5[%c0_10, %c0_11] : memref<1x128xf32, #tpu.memory_space<vmem>>, vector<1x128xf32>
      %12 = vector.broadcast %11 : vector<1x128xf32> to vector<128x128xf32>
      %13 = arith.addf %10, %12 : vector<128x128xf32>
      %c0_12 = arith.constant 0 : index
      %c0_13 = arith.constant 0 : index
      %14 = vector.load %arg7[%c0_12, %c0_13] : memref<128x128xf32, #tpu.memory_space<vmem>>, vector<128x128xf32>
      tpu.vector_store %arg7[%c0_12, %c0_13], %13 {strides = array<i32>} : memref<128x128xf32, #tpu.memory_space<vmem>>, vector<128x128xf32>,
    } else {
    }
    return
  }
  func.func @transform_0(%arg0: i32, %arg1: i32) -> (i32, i32) {
    %c0_i32 = arith.constant 0 : i32
    %c0_i32_0 = arith.constant 0 : i32
    return %arg0, %c0_i32 : i32, i32
  }
  func.func @transform_1(%arg0: i32, %arg1: i32) -> (i32, i32, i32) {
    %c0_i32 = arith.constant 0 : i32
    %c0_i32_0 = arith.constant 0 : i32
    %c0_i32_1 = arith.constant 0 : i32
    return %arg1, %c0_i32, %c0_i32_0 : i32, i32, i32
  }
  func.func @transform_2(%arg0: i32, %arg1: i32) -> (i32, i32) {
    %c0_i32 = arith.constant 0 : i32
    %c0_i32_0 = arith.constant 0 : i32
    %c0_i32_1 = arith.constant 0 : i32
    return %c0_i32, %c0_i32_0 : i32, i32
  }
  func.func @transform_3(%arg0: i32, %arg1: i32) -> (i32, i32) {
    %c0_i32 = arith.constant 0 : i32
    %c0_i32_0 = arith.constant 0 : i32
    %c0_i32_1 = arith.constant 0 : i32
    return %c0_i32, %c0_i32_0 : i32, i32
  }
  func.func @transform_4(%arg0: i32, %arg1: i32) -> (i32, i32) {
    %c1_i32 = arith.constant 1 : i32
    %0 = arith.muli %arg1, %c1_i32 : i32
    %1 = arith.addi %0, %arg0 : i32
    %c0_i32 = arith.constant 0 : i32
    %c0_i32_0 = arith.constant 0 : i32
    return %1, %c0_i32 : i32, i32
  }
  func.func @transform_5(%arg0: i32, %arg1: i32) -> (i32, i32) {
    %c0_i32 = arith.constant 0 : i32
    %c0_i32_0 = arith.constant 0 : i32
    return %arg0, %c0_i32 : i32, i32
  }
}

module attributes {stable_mosaic.version = 11 : i64} {
  func.func @_agg_kernel(%arg0: i32, %arg1: i32, %arg2: memref<128x384xbf16, #tpu.memory_space<vmem>>, %arg3: memref<384x128xbf16, #tpu.memory_space<vmem>>, %arg4: memref<128x128xf32, #tpu.memory_space<vmem>>, %arg5: memref<128x128xf32, #tpu.memory_space<vmem>>) attributes {dimension_semantics = [#tpu.dimension_semantics<parallel>, #tpu.dimension_semantics<arbitrary>], iteration_bounds = array<i64: 1, 1>, scalar_prefetch = 0 : i64, scratch_operands = 0 : i64, tpu.core_type = #tpu.core_type<tc>, window_params = [{transform_indices = @transform_0, window_bounds = array<i64: 128, 384>}, {transform_indices = @transform_1, window_bounds = array<i64: 384, 128>}, {transform_indices = @transform_2, window_bounds = array<i64: 128, 128>}, {transform_indices = @transform_3, window_bounds = array<i64: 128, 128>}]} {
    %c0_i32 = arith.constant 0 : i32
    %0 = arith.cmpi eq, %arg1, %c0_i32 : i32
    %1 = arith.extui %0 : i1 to i32
    %c0_i32_0 = arith.constant 0 : i32
    %2 = arith.cmpi ne, %1, %c0_i32_0 : i32
    scf.if %2 {
      %c0_10 = arith.constant 0 : index
      %c0_11 = arith.constant 0 : index
      %12 = vector.load %arg4[%c0_10, %c0_11] : memref<128x128xf32, #tpu.memory_space<vmem>>, vector<128x128xf32>
      %c0_12 = arith.constant 0 : index
      %c0_13 = arith.constant 0 : index
      %13 = vector.load %arg5[%c0_12, %c0_13] : memref<128x128xf32, #tpu.memory_space<vmem>>, vector<128x128xf32>
      tpu.vector_store %arg5[%c0_12, %c0_13], %12 {strides = array<i32>} : memref<128x128xf32, #tpu.memory_space<vmem>>, vector<128x128xf32>,
    } else {
    }
    %c0 = arith.constant 0 : index
    %c0_1 = arith.constant 0 : index
    %3 = vector.load %arg5[%c0, %c0_1] : memref<128x128xf32, #tpu.memory_space<vmem>>, vector<128x128xf32>
    %c0_2 = arith.constant 0 : index
    %c0_3 = arith.constant 0 : index
    %4 = vector.load %arg2[%c0_2, %c0_3] : memref<128x384xbf16, #tpu.memory_space<vmem>>, vector<128x384xbf16>
    %c0_4 = arith.constant 0 : index
    %c0_5 = arith.constant 0 : index
    %5 = vector.load %arg3[%c0_4, %c0_5] : memref<384x128xbf16, #tpu.memory_space<vmem>>, vector<384x128xbf16>
    %cst = arith.constant dense<0.000000e+00> : vector<128x128xf32>
    %6 = tpu.matmul %4, %5, %cst {dimension_numbers = #tpu.dot_dimension_numbers<[1], [0], [0], [1], [0, 0, 1, 1], [], []>} : vector<128x384xbf16>, vector<384x128xbf16>, vector<128x128xf32> -> vector<128x128xf32>
    %7 = arith.addf %3, %6 : vector<128x128xf32>
    %c0_6 = arith.constant 0 : index
    %c0_7 = arith.constant 0 : index
    %8 = vector.load %arg5[%c0_6, %c0_7] : memref<128x128xf32, #tpu.memory_space<vmem>>, vector<128x128xf32>
    tpu.vector_store %arg5[%c0_6, %c0_7], %7 {strides = array<i32>} : memref<128x128xf32, #tpu.memory_space<vmem>>, vector<128x128xf32>,
    %c0_i32_8 = arith.constant 0 : i32
    %9 = arith.cmpi eq, %arg1, %c0_i32_8 : i32
    %10 = arith.extui %9 : i1 to i32
    %c0_i32_9 = arith.constant 0 : i32
    %11 = arith.cmpi ne, %10, %c0_i32_9 : i32
    scf.if %11 {
      %c0_10 = arith.constant 0 : index
      %c0_11 = arith.constant 0 : index
      %12 = vector.load %arg5[%c0_10, %c0_11] : memref<128x128xf32, #tpu.memory_space<vmem>>, vector<128x128xf32>
      %cst_12 = arith.constant 0.000000e+00 : f32
      %13 = vector.broadcast %cst_12 : f32 to vector<128x128xf32>
      %14 = arith.maximumf %12, %13 : vector<128x128xf32>
      %c0_13 = arith.constant 0 : index
      %c0_14 = arith.constant 0 : index
      %15 = vector.load %arg5[%c0_13, %c0_14] : memref<128x128xf32, #tpu.memory_space<vmem>>, vector<128x128xf32>
      tpu.vector_store %arg5[%c0_13, %c0_14], %14 {strides = array<i32>} : memref<128x128xf32, #tpu.memory_space<vmem>>, vector<128x128xf32>,
    } else {
    }
    return
  }
  func.func @transform_0(%arg0: i32, %arg1: i32) -> (i32, i32) {
    %c0_i32 = arith.constant 0 : i32
    return %arg0, %arg1 : i32, i32
  }
  func.func @transform_1(%arg0: i32, %arg1: i32) -> (i32, i32) {
    %c0_i32 = arith.constant 0 : i32
    %c0_i32_0 = arith.constant 0 : i32
    return %arg1, %c0_i32 : i32, i32
  }
  func.func @transform_2(%arg0: i32, %arg1: i32) -> (i32, i32) {
    %c0_i32 = arith.constant 0 : i32
    %c0_i32_0 = arith.constant 0 : i32
    return %arg0, %c0_i32 : i32, i32
  }
  func.func @transform_3(%arg0: i32, %arg1: i32) -> (i32, i32) {
    %c0_i32 = arith.constant 0 : i32
    %c0_i32_0 = arith.constant 0 : i32
    return %arg0, %c0_i32 : i32, i32
  }
}

module attributes {stable_mosaic.version = 11 : i64} {
  func.func @_agg_kernel(%arg0: i32, %arg1: i32, %arg2: memref<128x384xbf16, #tpu.memory_space<vmem>>, %arg3: memref<384x128xbf16, #tpu.memory_space<vmem>>, %arg4: memref<128x128xf32, #tpu.memory_space<vmem>>, %arg5: memref<128x128xf32, #tpu.memory_space<vmem>>) attributes {dimension_semantics = [#tpu.dimension_semantics<parallel>, #tpu.dimension_semantics<arbitrary>], iteration_bounds = array<i64: 1, 1>, scalar_prefetch = 0 : i64, scratch_operands = 0 : i64, tpu.core_type = #tpu.core_type<tc>, window_params = [{transform_indices = @transform_0, window_bounds = array<i64: 128, 384>}, {transform_indices = @transform_1, window_bounds = array<i64: 384, 128>}, {transform_indices = @transform_2, window_bounds = array<i64: 128, 128>}, {transform_indices = @transform_3, window_bounds = array<i64: 128, 128>}]} {
    %c0_i32 = arith.constant 0 : i32
    %0 = arith.cmpi eq, %arg1, %c0_i32 : i32
    %1 = arith.extui %0 : i1 to i32
    %c0_i32_0 = arith.constant 0 : i32
    %2 = arith.cmpi ne, %1, %c0_i32_0 : i32
    scf.if %2 {
      %c0_8 = arith.constant 0 : index
      %c0_9 = arith.constant 0 : index
      %9 = vector.load %arg4[%c0_8, %c0_9] : memref<128x128xf32, #tpu.memory_space<vmem>>, vector<128x128xf32>
      %c0_10 = arith.constant 0 : index
      %c0_11 = arith.constant 0 : index
      %10 = vector.load %arg5[%c0_10, %c0_11] : memref<128x128xf32, #tpu.memory_space<vmem>>, vector<128x128xf32>
      tpu.vector_store %arg5[%c0_10, %c0_11], %9 {strides = array<i32>} : memref<128x128xf32, #tpu.memory_space<vmem>>, vector<128x128xf32>,
    } else {
    }
    %c0 = arith.constant 0 : index
    %c0_1 = arith.constant 0 : index
    %3 = vector.load %arg5[%c0, %c0_1] : memref<128x128xf32, #tpu.memory_space<vmem>>, vector<128x128xf32>
    %c0_2 = arith.constant 0 : index
    %c0_3 = arith.constant 0 : index
    %4 = vector.load %arg2[%c0_2, %c0_3] : memref<128x384xbf16, #tpu.memory_space<vmem>>, vector<128x384xbf16>
    %c0_4 = arith.constant 0 : index
    %c0_5 = arith.constant 0 : index
    %5 = vector.load %arg3[%c0_4, %c0_5] : memref<384x128xbf16, #tpu.memory_space<vmem>>, vector<384x128xbf16>
    %cst = arith.constant dense<0.000000e+00> : vector<128x128xf32>
    %6 = tpu.matmul %4, %5, %cst {dimension_numbers = #tpu.dot_dimension_numbers<[1], [0], [0], [1], [0, 0, 1, 1], [], []>} : vector<128x384xbf16>, vector<384x128xbf16>, vector<128x128xf32> -> vector<128x128xf32>
    %7 = arith.addf %3, %6 : vector<128x128xf32>
    %c0_6 = arith.constant 0 : index
    %c0_7 = arith.constant 0 : index
    %8 = vector.load %arg5[%c0_6, %c0_7] : memref<128x128xf32, #tpu.memory_space<vmem>>, vector<128x128xf32>
    tpu.vector_store %arg5[%c0_6, %c0_7], %7 {strides = array<i32>} : memref<128x128xf32, #tpu.memory_space<vmem>>, vector<128x128xf32>,
    return
  }
  func.func @transform_0(%arg0: i32, %arg1: i32) -> (i32, i32) {
    %c0_i32 = arith.constant 0 : i32
    return %arg0, %arg1 : i32, i32
  }
  func.func @transform_1(%arg0: i32, %arg1: i32) -> (i32, i32) {
    %c0_i32 = arith.constant 0 : i32
    %c0_i32_0 = arith.constant 0 : i32
    return %arg1, %c0_i32 : i32, i32
  }
  func.func @transform_2(%arg0: i32, %arg1: i32) -> (i32, i32) {
    %c0_i32 = arith.constant 0 : i32
    %c0_i32_0 = arith.constant 0 : i32
    return %arg0, %c0_i32 : i32, i32
  }
  func.func @transform_3(%arg0: i32, %arg1: i32) -> (i32, i32) {
    %c0_i32 = arith.constant 0 : i32
    %c0_i32_0 = arith.constant 0 : i32
    return %arg0, %c0_i32 : i32, i32
  }
}

</mosaic_0001>

<bundles_post_ra>
// kernel: heterosage_forward.4
= control target key start
LH: loop header
LB: loop body
LE: loop exit
PB: predicated region body
PF: predicated region fallthrough
CT: control target
= control target key end

     0   :  { %s1237_s18 = smov 0   ;;  %s1239_s19 = smov 0   ;;  %s1417_s0 = inlined_call_operand.vmem [shape: bf16[128,128], index: 0, kind: input, shape index: {}]   ;;  %s1418_s1 = inlined_call_operand.vmem [shape: bf16[3,128,128], index: 1, kind: input, shape index: {}]   ;;  %s1419_s2 = inlined_call_operand.vmem [shape: bf16[128,128], index: 2, kind: input, shape index: {}]   ;;  %s1420_s3 = inlined_call_operand.vmem [shape: f32[1,128], index: 3, kind: input, shape index: {}]   ;;  %s1421_s4 = inlined_call_operand.vmem [shape: bf16[384,128], index: 4, kind: output, shape index: {0}]   ;;  %s1422_s5 = inlined_call_operand.vmem [shape: f32[128,128], index: 5, kind: output, shape index: {1}]  }
   0x1   :  { %s1241_s20 = smov 0  }
   0x2 LB: > { %s25_s21 = sadd.s32 1, %s1201_s19  ;;  %p892_p0 = scmp.ge.s32.totalorder %s1205_s20, 1  ;;  %s1205_s20 = sphi %s1241_s20, %s16_s20   ;;  %s1201_s19 = sphi %s1239_s19, %s1424_s19   ;;  %s1197_s18 = sphi %s1237_s18, %s1423_s18  }
   0x3   : > { %p26_p1 = scmp.ge.s32.totalorder %s25_s21, 3  ;;  %p215_p2 = scmp.lt.s32.totalorder %s1205_s20, 4 }
   0x5   : > { %s1426_s21 = smov (%p26_p1, %s25_s21), 0  ;;  %p216_p3 = pnand %p892_p0, %p215_p2 }
   0x6   : > { %p260_p4 = scmp.lt.s32.totalorder (!%p216_p3), %s1197_s18, 2  ;;  %v1261_v0 = vld [vmem:[%s1417_s0] sm:$0xff] (!%p216_p3)   ;;  %v1287_v10 = vld [vmem:[%s1417_s0 + $0x8] sm:$0xff] (!%p216_p3)   ;;  %v1297_v12 = vld [vmem:[%s1417_s0 + $0x10] sm:$0xff] (!%p216_p3)   ;;  %s895_s22 = sshll.u32 (!%p216_p3), %s1197_s18, 4 }
   0x7   : > { %219 = sbr.rel (%p216_p3) target bundleno = 491 (0x1eb), region = 36  ;;  %v1266_v1 = vld [vmem:[%s1417_s0 + $0x20] sm:$0xff] (!%p216_p3)   ;;  %1055 = vmatprep.mubr.bf16.mxu0 (!%p216_p3), %v1261_v0  ;;  %v1292_v11 = vld [vmem:[%s1417_s0 + $0x28] sm:$0xff] (!%p216_p3)   ;;  %v1302_v13 = vld [vmem:[%s1417_s0 + $0x30] sm:$0xff] (!%p216_p3)   ;;  %p267_p5 = scmp.lt.s32.totalorder (!%p216_p3), %s895_s22, 47 }
   0x8   : > { %1063 = vmatprep.mubr.bf16.mxu1 (!%p216_p3), %v1266_v1  ;;  %v1311_v14 = vld [vmem:[%s1417_s0 + $0x18] sm:$0xff] (!%p216_p3)   ;;  %p929_p6 = scmp.ne.s32.totalorder (!%p216_p3), %s1197_s18, 0 }
   0x9   : > { %v1316_v15 = vld [vmem:[%s1417_s0 + $0x38] sm:$0xff] (!%p216_p3)  }
   0xe   : > { %s261_s26 = scalar_select %p260_p4, %s1197_s18, 2 }
   0xf   : > { %s1428_s22 = smov (!%p267_p5, %s895_s22), 47  ;;  %v1175_v40 = vld [vmem:[%s1419_s2] sm:$0xff] (!%p929_p6)   ;;  %v1176_v41 = vld [vmem:[%s1419_s2 + $0x8] sm:$0xff] (!%p929_p6)   ;;  %v1177_v42 = vld [vmem:[%s1419_s2 + $0x10] sm:$0xff] (!%p929_p6)  }
  0x10   : > { %s943_s27 = sshll.u32 %s261_s26, 6  ;;  %s896_s23 = sshll.u32 %s1428_s22, 2  ;;  %v1178_v43 = vld [vmem:[%s1419_s2 + $0x18] sm:$0xff] (!%p929_p6)   ;;  %v1179_v44 = vld [vmem:[%s1419_s2 + $0x20] sm:$0xff] (!%p929_p6)   ;;  %v1180_v45 = vld [vmem:[%s1419_s2 + $0x28] sm:$0xff] (!%p929_p6)  }
  0x11   : > { %s1274_s30 = scalar_lea.vmem %s1418_s1, %s943_s27  ;;  %s270_s26 = scalar_lea.vmem %s1421_s4, %s896_s23  ;;  %v1181_v46 = vld [vmem:[%s1419_s2 + $0x30] sm:$0xff] (!%p929_p6)   ;;  %v1182_v47 = vld [vmem:[%s1419_s2 + $0x38] sm:$0xff] (!%p929_p6)   ;;  %v930_v48 = vld [vmem:[%s1420_s3] ss:$0 sm:$0xff] (!%p929_p6) }
  0x12   : > { %v1159_v2 = vld [vmem:[%s1274_s30] sm:$0xff]   ;;  %v1160_v3 = vld [vmem:[%s1274_s30 + $0x8] sm:$0xff]   ;;  %v1161_v4 = vld [vmem:[%s1274_s30 + $0x10] sm:$0xff]  }
  0x13   : > { %1039 = vmatprep.subr.bf16.mxu0 %v1159_v2  ;;  %1103 = vmatprep.subr.bf16.mxu1 %v1159_v2  ;;  %v1162_v5 = vld [vmem:[%s1274_s30 + $0x18] sm:$0xff]   ;;  %v1163_v6 = vld [vmem:[%s1274_s30 + $0x20] sm:$0xff]   ;;  %v1164_v7 = vld [vmem:[%s1274_s30 + $0x28] sm:$0xff]  }
  0x14   : > { %1040 = vmatpush3.bf16.msra.mxu0 %v1159_v2  ;;  %1111 = vmatpush3.bf16.msra.mxu1 %v1159_v2  ;;  %v1165_v8 = vld [vmem:[%s1274_s30 + $0x30] sm:$0xff]   ;;  %v1166_v9 = vld [vmem:[%s1274_s30 + $0x38] sm:$0xff]  }
  0x15   : > { %1041 = vmatprep.subr.bf16.mxu0 %v1160_v3  ;;  %1104 = vmatprep.subr.bf16.mxu1 %v1160_v3 }
  0x18   : > { %1042 = vmatpush3.bf16.msra.mxu0 %v1160_v3  ;;  %1112 = vmatpush3.bf16.msra.mxu1 %v1160_v3 }
  0x19   : > { %1043 = vmatprep.subr.bf16.mxu0 %v1161_v4  ;;  %1105 = vmatprep.subr.bf16.mxu1 %v1161_v4 }
  0x1c   : > { %1044 = vmatpush3.bf16.msra.mxu0 %v1161_v4  ;;  %1113 = vmatpush3.bf16.msra.mxu1 %v1161_v4 }
  0x1d   : > { %1045 = vmatprep.subr.bf16.mxu0 %v1162_v5  ;;  %1106 = vmatprep.subr.bf16.mxu1 %v1162_v5 }
  0x20   : > { %1046 = vmatpush3.bf16.msra.mxu0 %v1162_v5  ;;  %1114 = vmatpush3.bf16.msra.mxu1 %v1162_v5 }
  0x21   : > { %1047 = vmatprep.subr.bf16.mxu0 %v1163_v6  ;;  %1107 = vmatprep.subr.bf16.mxu1 %v1163_v6 }
  0x24   : > { %1048 = vmatpush3.bf16.msra.mxu0 %v1163_v6  ;;  %1115 = vmatpush3.bf16.msra.mxu1 %v1163_v6 }
  0x25   : > { %1049 = vmatprep.subr.bf16.mxu0 %v1164_v7  ;;  %1108 = vmatprep.subr.bf16.mxu1 %v1164_v7 }
  0x28   : > { %1050 = vmatpush3.bf16.msra.mxu0 %v1164_v7  ;;  %1116 = vmatpush3.bf16.msra.mxu1 %v1164_v7 }
  0x29   : > { %1051 = vmatprep.subr.bf16.mxu0 %v1165_v8  ;;  %1109 = vmatprep.subr.bf16.mxu1 %v1165_v8 }
  0x2c   : > { %1052 = vmatpush3.bf16.msra.mxu0 %v1165_v8  ;;  %1117 = vmatpush3.bf16.msra.mxu1 %v1165_v8 }
  0x2d   : > { %1053 = vmatprep.subr.bf16.mxu0 %v1166_v9  ;;  %1110 = vmatprep.subr.bf16.mxu1 %v1166_v9 }
  0x30   : > { %1054 = vmatpush3.bf16.msra.mxu0 %v1166_v9  ;;  %1118 = vmatpush3.bf16.msra.mxu1 %v1166_v9 }
  0x31   : > { %1071 = vmatprep.subr.bf16.mxu0 (!%p929_p6), %v1175_v40  ;;  %1119 = vmatprep.subr.bf16.mxu1 (!%p929_p6), %v1175_v40 }
  0x33   : > { %1056 = vmatmul.mubr.bf16.vlgmr.msra.gmra.mrb[0].mxu0 %v1287_v10  ;;  %1064 = vmatmul.mubr.bf16.vlgmr.msra.gmra.mrb[0].mxu1 %v1292_v11 }
  0x34   : > { %1059 = vmatprep.mubr.bf16.mxu0 %v1297_v12  ;;  %1067 = vmatprep.mubr.bf16.mxu1 %v1302_v13 }
  0x35   : > { %1072 = vmatpush3.bf16.msra.mxu0 (!%p929_p6), %v1175_v40  ;;  %1127 = vmatpush3.bf16.msra.mxu1 (!%p929_p6), %v1175_v40 }
  0x36   : > { %1073 = vmatprep.subr.bf16.mxu0 (!%p929_p6), %v1176_v41  ;;  %1120 = vmatprep.subr.bf16.mxu1 (!%p929_p6), %v1176_v41 }
  0x39   : > { %1074 = vmatpush3.bf16.msra.mxu0 (!%p929_p6), %v1176_v41  ;;  %1128 = vmatpush3.bf16.msra.mxu1 (!%p929_p6), %v1176_v41 }
  0x3a   : > { %1075 = vmatprep.subr.bf16.mxu0 (!%p929_p6), %v1177_v42  ;;  %1121 = vmatprep.subr.bf16.mxu1 (!%p929_p6), %v1177_v42 }
  0x3b   : > { %1060 = vmatmul.mubr.bf16.gmra.mrb[4].mxu0 %v1311_v14  ;;  %1068 = vmatmul.mubr.bf16.gmra.mrb[4].mxu1 %v1316_v15 }
  0x3c   : > { %1087 = vmatprep.mubr.bf16.mxu0 (!%p929_p6), %v1261_v0  ;;  %1095 = vmatprep.mubr.bf16.mxu1 (!%p929_p6), %v1266_v1 }
  0x3d   : > { %1076 = vmatpush3.bf16.msra.mxu0 (!%p929_p6), %v1177_v42  ;;  %1129 = vmatpush3.bf16.msra.mxu1 (!%p929_p6), %v1177_v42 }
  0x3e   : > { %1077 = vmatprep.subr.bf16.mxu0 (!%p929_p6), %v1178_v43  ;;  %1122 = vmatprep.subr.bf16.mxu1 (!%p929_p6), %v1178_v43 }
  0x41   : > { %1078 = vmatpush3.bf16.msra.mxu0 (!%p929_p6), %v1178_v43  ;;  %1130 = vmatpush3.bf16.msra.mxu1 (!%p929_p6), %v1178_v43 }
  0x42   : > { %1079 = vmatprep.subr.bf16.mxu0 (!%p929_p6), %v1179_v44  ;;  %1123 = vmatprep.subr.bf16.mxu1 (!%p929_p6), %v1179_v44 }
  0x45   : > { %1080 = vmatpush3.bf16.msra.mxu0 (!%p929_p6), %v1179_v44  ;;  %1131 = vmatpush3.bf16.msra.mxu1 (!%p929_p6), %v1179_v44 }
  0x46   : > { %1081 = vmatprep.subr.bf16.mxu0 (!%p929_p6), %v1180_v45  ;;  %1124 = vmatprep.subr.bf16.mxu1 (!%p929_p6), %v1180_v45 }
  0x49   : > { %1082 = vmatpush3.bf16.msra.mxu0 (!%p929_p6), %v1180_v45  ;;  %1132 = vmatpush3.bf16.msra.mxu1 (!%p929_p6), %v1180_v45 }
  0x4a   : > { %1083 = vmatprep.subr.bf16.mxu0 (!%p929_p6), %v1181_v46  ;;  %1125 = vmatprep.subr.bf16.mxu1 (!%p929_p6), %v1181_v46 }
  0x4d   : > { %1084 = vmatpush3.bf16.msra.mxu0 (!%p929_p6), %v1181_v46  ;;  %1133 = vmatpush3.bf16.msra.mxu1 (!%p929_p6), %v1181_v46 }
  0x4e   : > { %1085 = vmatprep.subr.bf16.mxu0 (!%p929_p6), %v1182_v47  ;;  %1126 = vmatprep.subr.bf16.mxu1 (!%p929_p6), %v1182_v47 }
  0x51   : > { %1086 = vmatpush3.bf16.msra.mxu0 (!%p929_p6), %v1182_v47  ;;  %1134 = vmatpush3.bf16.msra.mxu1 (!%p929_p6), %v1182_v47 }
 0x106   : > { %v1057_v16 = vpop.f32.mrb[0].mxu0  ;;  %v1065_v17 = vpop.f32.mrb[0].mxu1 }
 0x107   : > { %v442_v18 = vpop.f32.mrb[1].mxu0  ;;  %v474_v19 = vpop.f32.mrb[1].mxu1 }
 0x108   : > { %v1058_v20 = vpop.f32.mrb[2].mxu0  ;;  %v1066_v21 = vpop.f32.mrb[2].mxu1 }
 0x109   : > { %v968_v22 = vpack.c.bf16 %v1058_v20, %v1057_v16  ;;  %v988_v23 = vpack.c.bf16 %v1066_v21, %v1065_v17  ;;  %v445_v24 = vpop.f32.mrb[3].mxu0  ;;  %v477_v25 = vpop.f32.mrb[3].mxu1  ;;  %1088 = vmatmul.mubr.bf16.vlgmr.msra.gmra.mrb[0].mxu0 (!%p929_p6), %v1287_v10  ;;  %1096 = vmatmul.mubr.bf16.vlgmr.msra.gmra.mrb[0].mxu1 (!%p929_p6), %v1292_v11 }
 0x10a   : > { %v963_v26 = vpack.c.bf16 %v445_v24, %v442_v18  ;;  %v983_v27 = vpack.c.bf16 %v477_v25, %v474_v19  ;;  %1091 = vmatprep.mubr.bf16.mxu0 (!%p929_p6), %v1297_v12  ;;  %1099 = vmatprep.mubr.bf16.mxu1 (!%p929_p6), %v1302_v13 }
 0x10b   : > { %1000 = vst [vmem:[%s270_s26 + $0x8] sm:$0xff] %v968_v22   ;;  %1004 = vst [vmem:[%s270_s26 + $0x28] sm:$0xff] %v988_v23  }
 0x10c   : > { %964 = vst [vmem:[%s270_s26] sm:$0xff] %v963_v26   ;;  %1003 = vst [vmem:[%s270_s26 + $0x20] sm:$0xff] %v983_v27  }
 0x10e   : > { %v1061_v28 = vpop.f32.mrb[4].mxu0  ;;  %v1069_v29 = vpop.f32.mrb[4].mxu1  ;;  %588 = sbr.rel (%p929_p6) target bundleno = 491 (0x1eb), region = 40 }
 0x10f   : > { %v458_v30 = vpop.f32.mrb[5].mxu0  ;;  %v490_v31 = vpop.f32.mrb[5].mxu1 }
 0x110   : > { %v1062_v32 = vpop.f32.mrb[6].mxu0  ;;  %v1070_v33 = vpop.f32.mrb[6].mxu1 }
 0x111   : > { %v978_v34 = vpack.c.bf16 %v1062_v32, %v1061_v28  ;;  %v998_v35 = vpack.c.bf16 %v1070_v33, %v1069_v29  ;;  %v461_v36 = vpop.f32.mrb[7].mxu0  ;;  %v493_v37 = vpop.f32.mrb[7].mxu1  ;;  %1092 = vmatmul.mubr.bf16.gmra.mrb[4].mxu0 (!%p929_p6), %v1311_v14  ;;  %1100 = vmatmul.mubr.bf16.gmra.mrb[4].mxu1 (!%p929_p6), %v1316_v15 }
 0x112   : > { %v973_v38 = vpack.c.bf16 %v461_v36, %v458_v30  ;;  %v993_v39 = vpack.c.bf16 %v493_v37, %v490_v31 }
 0x113   : > { %1002 = vst [vmem:[%s270_s26 + $0x18] sm:$0xff] %v978_v34   ;;  %1006 = vst [vmem:[%s270_s26 + $0x38] sm:$0xff] %v998_v35  }
 0x114   : > { %1001 = vst [vmem:[%s270_s26 + $0x10] sm:$0xff] %v973_v38   ;;  %1005 = vst [vmem:[%s270_s26 + $0x30] sm:$0xff] %v993_v39  }
 0x1dc   : > { %v1089_v49 = vpop.f32.mrb[0].mxu0  ;;  %v1097_v50 = vpop.f32.mrb[0].mxu1 }
 0x1dd   : > { %v703_v51 = vadd.f32 %v1089_v49, %v930_v48  ;;  %v735_v52 = vadd.f32 %v1097_v50, %v930_v48  ;;  %v694_v53 = vpop.f32.mrb[1].mxu0  ;;  %v726_v54 = vpop.f32.mrb[1].mxu1 }
 0x1de   : > { %v695_v55 = vadd.f32 %v930_v48, %v694_v53  ;;  %v727_v56 = vadd.f32 %v930_v48, %v726_v54  ;;  %v1090_v57 = vpop.f32.mrb[2].mxu0  ;;  %v1098_v58 = vpop.f32.mrb[2].mxu1 }
 0x1df   : > { %759 = vst [vmem:[%s1422_s5 + $0x10] sm:$0xff] %v703_v51  ;;  %767 = vst [vmem:[%s1422_s5 + $0x50] sm:$0xff] %v735_v52  ;;  %v706_v59 = vadd.f32 %v1090_v57, %v930_v48  ;;  %v738_v60 = vadd.f32 %v1098_v58, %v930_v48  ;;  %v697_v61 = vpop.f32.mrb[3].mxu0  ;;  %v729_v62 = vpop.f32.mrb[3].mxu1 }
 0x1e0   : > { %757 = vst [vmem:[%s1422_s5] sm:$0xff] %v695_v55  ;;  %765 = vst [vmem:[%s1422_s5 + $0x40] sm:$0xff] %v727_v56  ;;  %v698_v63 = vadd.f32 %v930_v48, %v697_v61  ;;  %v730_v0 = vadd.f32 %v930_v48, %v729_v62 }
 0x1e1   : > { %760 = vst [vmem:[%s1422_s5 + $0x18] sm:$0xff] %v706_v59  ;;  %768 = vst [vmem:[%s1422_s5 + $0x58] sm:$0xff] %v738_v60 }
 0x1e2   : > { %758 = vst [vmem:[%s1422_s5 + $0x8] sm:$0xff] %v698_v63  ;;  %766 = vst [vmem:[%s1422_s5 + $0x48] sm:$0xff] %v730_v0 }
 0x1e4   : > { %v1093_v1 = vpop.f32.mrb[4].mxu0  ;;  %v1101_v2 = vpop.f32.mrb[4].mxu1 }
 0x1e5   : > { %v719_v3 = vadd.f32 %v1093_v1, %v930_v48  ;;  %v751_v4 = vadd.f32 %v1101_v2, %v930_v48  ;;  %v710_v5 = vpop.f32.mrb[5].mxu0  ;;  %v742_v6 = vpop.f32.mrb[5].mxu1 }
 0x1e6   : > { %v711_v7 = vadd.f32 %v930_v48, %v710_v5  ;;  %v743_v8 = vadd.f32 %v930_v48, %v742_v6  ;;  %v1094_v9 = vpop.f32.mrb[6].mxu0  ;;  %v1102_v10 = vpop.f32.mrb[6].mxu1 }
 0x1e7   : > { %763 = vst [vmem:[%s1422_s5 + $0x30] sm:$0xff] %v719_v3  ;;  %771 = vst [vmem:[%s1422_s5 + $0x70] sm:$0xff] %v751_v4  ;;  %v722_v11 = vadd.f32 %v1094_v9, %v930_v48  ;;  %v754_v12 = vadd.f32 %v1102_v10, %v930_v48  ;;  %v713_v13 = vpop.f32.mrb[7].mxu0  ;;  %v745_v14 = vpop.f32.mrb[7].mxu1 }
 0x1e8   : > { %761 = vst [vmem:[%s1422_s5 + $0x20] sm:$0xff] %v711_v7  ;;  %769 = vst [vmem:[%s1422_s5 + $0x60] sm:$0xff] %v743_v8  ;;  %v714_v15 = vadd.f32 %v930_v48, %v713_v13  ;;  %v746_v16 = vadd.f32 %v930_v48, %v745_v14 }
 0x1e9   : > { %764 = vst [vmem:[%s1422_s5 + $0x38] sm:$0xff] %v722_v11  ;;  %772 = vst [vmem:[%s1422_s5 + $0x78] sm:$0xff] %v754_v12 }
 0x1ea   : > { %762 = vst [vmem:[%s1422_s5 + $0x28] sm:$0xff] %v714_v15  ;;  %770 = vst [vmem:[%s1422_s5 + $0x68] sm:$0xff] %v746_v16 }
 0x1eb PF: > { %s16_s20 = sadd.s32 1, %s1205_s20   ;;  %s1423_s18 = smov %s1201_s19 }
 0x1ec   : > { %p13_p7 = scmp.ge.s32.totalorder %s16_s20, 5   ;;  %s1424_s19 = smov %s1426_s21 }
 0x1ee   :  { %15 = sbr.rel (!%p13_p7) target bundleno = 2 (0x2), region = 85 }

// kernel: heterosage_forward.5
= control target key start
LH: loop header
LB: loop body
LE: loop exit
PB: predicated region body
PF: predicated region fallthrough
CT: control target
= control target key end

     0   :  { %s1182_s1 = inlined_call_operand.vmem [shape: bf16[384,128], index: 1, kind: input, shape index: {}]   ;;  %s1183_s0 = inlined_call_operand.vmem [shape: bf16[128,384], index: 0, kind: input, shape index: {}]   ;;  %s1184_s2 = inlined_call_operand.vmem [shape: f32[128,128], index: 2, kind: input, shape index: {}]   ;;  %s1185_s3 = inlined_call_operand.vmem [shape: f32[128,128], index: 3, kind: output, shape index: {}]  }
   0x1   :  { %v860_v0 = vld [vmem:[%s1182_s1 + $0x40] sm:$0xff]   ;;  %v863_v3 = vld [vmem:[%s1182_s1 + $0x48] sm:$0xff]   ;;  %v866_v6 = vld [vmem:[%s1182_s1 + $0x50] sm:$0xff]  }
   0x2   :  { %v861_v1 = vld [vmem:[%s1182_s1] sm:$0xff]   ;;  %748 = vmatprep.subr.bf16.mxu0 %v860_v0  ;;  %v864_v4 = vld [vmem:[%s1182_s1 + $0x8] sm:$0xff]   ;;  %v867_v7 = vld [vmem:[%s1182_s1 + $0x10] sm:$0xff]  }
   0x3   :  { %v862_v2 = vld [vmem:[%s1182_s1 + $0x80] sm:$0xff]   ;;  %749 = vmatpush3.bf16.msra.mxu0 %v861_v1  ;;  %v865_v5 = vld [vmem:[%s1182_s1 + $0x88] sm:$0xff]   ;;  %v868_v8 = vld [vmem:[%s1182_s1 + $0x90] sm:$0xff]  }
   0x4   :  { %828 = vmatprep.subr.bf16.mxu1 %v862_v2  ;;  %750 = vmatprep.subr.bf16.mxu0 %v863_v3  ;;  %v869_v9 = vld [vmem:[%s1182_s1 + $0x58] sm:$0xff]   ;;  %v872_v12 = vld [vmem:[%s1182_s1 + $0x60] sm:$0xff]   ;;  %v875_v15 = vld [vmem:[%s1182_s1 + $0x68] sm:$0xff]  }
   0x5   :  { %829 = vmatpush3.bf16.msra.mxu1 %v862_v2  ;;  %v870_v10 = vld [vmem:[%s1182_s1 + $0x18] sm:$0xff]   ;;  %v874_v13 = vld [vmem:[%s1182_s1 + $0xa0] sm:$0xff]   ;;  %v877_v16 = vld [vmem:[%s1182_s1 + $0xa8] sm:$0xff]  }
   0x6   :  { %830 = vmatprep.subr.bf16.mxu1 %v865_v5  ;;  %v871_v11 = vld [vmem:[%s1182_s1 + $0x98] sm:$0xff]   ;;  %v873_v14 = vld [vmem:[%s1182_s1 + $0x20] sm:$0xff]   ;;  %v876_v17 = vld [vmem:[%s1182_s1 + $0x28] sm:$0xff]  }
   0x7   :  { %751 = vmatpush3.bf16.msra.mxu0 %v864_v4  ;;  %v878_v18 = vld [vmem:[%s1182_s1 + $0x70] sm:$0xff]   ;;  %v881_v21 = vld [vmem:[%s1182_s1 + $0x78] sm:$0xff]   ;;  %v884_v26 = vld [vmem:[%s1183_s0] ss:$12 sps:$4 sm:$0xff]  }
   0x8   :  { %752 = vmatprep.subr.bf16.mxu0 %v866_v6  ;;  %v879_v19 = vld [vmem:[%s1182_s1 + $0x30] sm:$0xff]   ;;  %v883_v22 = vld [vmem:[%s1182_s1 + $0xb8] sm:$0xff]   ;;  %v888_v28 = vld [vmem:[%s1183_s0 + $0x20] ss:$12 sps:$4 sm:$0xff]  }
   0x9   :  { %831 = vmatpush3.bf16.msra.mxu1 %v865_v5  ;;  %v880_v20 = vld [vmem:[%s1182_s1 + $0xb0] sm:$0xff]   ;;  %v882_v25 = vld [vmem:[%s1182_s1 + $0x38] sm:$0xff]   ;;  %v904_v36 = vld [vmem:[%s1183_s0 + $0x80] ss:$12 sps:$4 sm:$0xff]  }
   0xa   :  { %832 = vmatprep.subr.bf16.mxu1 %v868_v8  ;;  %v886_v23 = vld [vmem:[%s1183_s0 + $0x4] ss:$12 sps:$4 sm:$0xff]   ;;  %v887_v24 = vld [vmem:[%s1183_s0 + $0x8] ss:$12 sps:$4 sm:$0xff]   ;;  %v897_v35 = vld [vmem:[%s1183_s0 + $0x4c] ss:$12 sps:$4 sm:$0xff]  }
   0xb   :  { %753 = vmatpush3.bf16.msra.mxu0 %v867_v7  ;;  %451 = vmatprep.mubr.bf16.mxu0 %v886_v23  ;;  %v889_v27 = vld [vmem:[%s1183_s0 + $0x1c] ss:$12 sps:$4 sm:$0xff]   ;;  %v895_v29 = vld [vmem:[%s1183_s0 + $0x38] ss:$12 sps:$4 sm:$0xff]   ;;  %v892_v31 = vld [vmem:[%s1183_s0 + $0x34] ss:$12 sps:$4 sm:$0xff]  }
   0xc   :  { %754 = vmatprep.subr.bf16.mxu0 %v869_v9  ;;  %844 = vmatprep.mubr.bf16.mxu1 %v887_v24  ;;  %v891_v30 = vld [vmem:[%s1183_s0 + $0x18] ss:$12 sps:$4 sm:$0xff]   ;;  %v896_v32 = vld [vmem:[%s1183_s0 + $0x50] ss:$12 sps:$4 sm:$0xff]   ;;  %v903_v33 = vld [vmem:[%s1183_s0 + $0x68] ss:$12 sps:$4 sm:$0xff]  }
   0xd   :  { %833 = vmatpush3.bf16.msra.mxu1 %v868_v8  ;;  %v894_v34 = vld [vmem:[%s1183_s0 + $0x30] ss:$12 sps:$4 sm:$0xff]   ;;  %v911_v37 = vld [vmem:[%s1183_s0 + $0x98] ss:$12 sps:$4 sm:$0xff]   ;;  %v899_v38 = vld [vmem:[%s1183_s0 + $0x48] ss:$12 sps:$4 sm:$0xff]  }
   0xe   :  { %834 = vmatprep.subr.bf16.mxu1 %v871_v11  ;;  %v900_v39 = vld [vmem:[%s1183_s0 + $0x64] ss:$12 sps:$4 sm:$0xff]   ;;  %v902_v41 = vld [vmem:[%s1183_s0 + $0x60] ss:$12 sps:$4 sm:$0xff]   ;;  %v905_v42 = vld [vmem:[%s1183_s0 + $0x7c] ss:$12 sps:$4 sm:$0xff]  }
   0xf   :  { %755 = vmatpush3.bf16.msra.mxu0 %v870_v10  ;;  %v912_v40 = vld [vmem:[%s1183_s0 + $0xb0] ss:$12 sps:$4 sm:$0xff]   ;;  %v907_v43 = vld [vmem:[%s1183_s0 + $0x78] ss:$12 sps:$4 sm:$0xff]   ;;  %v908_v44 = vld [vmem:[%s1183_s0 + $0x94] ss:$12 sps:$4 sm:$0xff]  }
  0x10   :  { %756 = vmatprep.subr.bf16.mxu0 %v872_v12  ;;  %v910_v45 = vld [vmem:[%s1183_s0 + $0x90] ss:$12 sps:$4 sm:$0xff]   ;;  %v913_v46 = vld [vmem:[%s1183_s0 + $0xac] ss:$12 sps:$4 sm:$0xff]   ;;  %v915_v47 = vld [vmem:[%s1183_s0 + $0xa8] ss:$12 sps:$4 sm:$0xff]  }
  0x11   :  { %835 = vmatpush3.bf16.msra.mxu1 %v871_v11  ;;  %v19_v54 = vld [vmem:[%s1184_s2] sm:$0xff]  ;;  %v20_v59 = vld [vmem:[%s1184_s2 + $0x8] sm:$0xff]  ;;  %v21_v7 = vld [vmem:[%s1184_s2 + $0x10] sm:$0xff] }
  0x12   :  { %836 = vmatprep.subr.bf16.mxu1 %v874_v13 }
  0x13   :  { %757 = vmatpush3.bf16.msra.mxu0 %v873_v14 }
  0x14   :  { %758 = vmatprep.subr.bf16.mxu0 %v875_v15 }
  0x15   :  { %837 = vmatpush3.bf16.msra.mxu1 %v874_v13  ;;  %v22_v13 = vld [vmem:[%s1184_s2 + $0x18] sm:$0xff] }
  0x16   :  { %838 = vmatprep.subr.bf16.mxu1 %v877_v16 }
  0x17   :  { %759 = vmatpush3.bf16.msra.mxu0 %v876_v17 }
  0x18   :  { %760 = vmatprep.subr.bf16.mxu0 %v878_v18 }
  0x19   :  { %839 = vmatpush3.bf16.msra.mxu1 %v877_v16 }
  0x1a   :  { %840 = vmatprep.subr.bf16.mxu1 %v880_v20 }
  0x1b   :  { %761 = vmatpush3.bf16.msra.mxu0 %v879_v19 }
  0x1c   :  { %762 = vmatprep.subr.bf16.mxu0 %v881_v21 }
  0x1d   :  { %841 = vmatpush3.bf16.msra.mxu1 %v880_v20 }
  0x1e   :  { %842 = vmatprep.subr.bf16.mxu1 %v883_v22 }
  0x1f   :  { %763 = vmatpush3.bf16.msra.mxu0 %v882_v25 }
  0x21   :  { %843 = vmatpush3.bf16.msra.mxu1 %v883_v22 }
  0x22   :  { %452 = vmatmul.mubr.bf16.vlgmr.msra.gmra.mrb[0].mxu0 %v884_v26  ;;  %v23_v26 = vld [vmem:[%s1184_s2 + $0x20] sm:$0xff] }
  0x23   :  { %459 = vmatprep.mubr.bf16.mxu0 %v889_v27 }
  0x24   :  { %845 = vmatmul.mubr.bf16.vlgmr.msra.gmra.mrb[0].mxu1 %v888_v28 }
  0x25   :  { %848 = vmatprep.mubr.bf16.mxu1 %v895_v29 }
  0x2a   :  { %460 = vmatmul.mubr.bf16.gmra.mrb[4].mxu0 %v891_v30 }
  0x2b   :  { %467 = vmatprep.mubr.bf16.mxu0 %v892_v31  ;;  %v24_v31 = vld [vmem:[%s1184_s2 + $0x28] sm:$0xff] }
  0x2c   :  { %849 = vmatmul.mubr.bf16.gmra.mrb[4].mxu1 %v896_v32 }
  0x2d   :  { %852 = vmatprep.mubr.bf16.mxu1 %v903_v33 }
  0x32   :  { %468 = vmatmul.mubr.bf16.gmra.mrb[8].mxu0 %v894_v34 }
  0x33   :  { %475 = vmatprep.mubr.bf16.mxu0 %v897_v35 }
  0x34   :  { %853 = vmatmul.mubr.bf16.gmra.mrb[8].mxu1 %v904_v36 }
  0x35   :  { %856 = vmatprep.mubr.bf16.mxu1 %v911_v37 }
  0x3a   :  { %476 = vmatmul.mubr.bf16.gmra.mrb[12].mxu0 %v899_v38 }
  0x3b   :  { %483 = vmatprep.mubr.bf16.mxu0 %v900_v39 }
  0x3c   :  { %857 = vmatmul.mubr.bf16.gmra.mrb[12].mxu1 %v912_v40 }
  0x42   :  { %484 = vmatmul.mubr.bf16.gmra.mrb[16].mxu0 %v902_v41 }
  0x43   :  { %491 = vmatprep.mubr.bf16.mxu0 %v905_v42 }
  0x4a   :  { %492 = vmatmul.mubr.bf16.gmra.mrb[20].mxu0 %v907_v43  ;;  %v25_v43 = vld [vmem:[%s1184_s2 + $0x30] sm:$0xff] }
  0x4b   :  { %499 = vmatprep.mubr.bf16.mxu0 %v908_v44 }
  0x52   :  { %500 = vmatmul.mubr.bf16.gmra.mrb[24].mxu0 %v910_v45 }
  0x53   :  { %507 = vmatprep.mubr.bf16.mxu0 %v913_v46 }
  0x5a   :  { %508 = vmatmul.mubr.bf16.gmra.mrb[28].mxu0 %v915_v47 }
  0xf5   :  { %v764_v48 = vpop.f32.mrb[0].mxu0 }
  0xf6   :  { %v765_v49 = vpop.f32.mrb[1].mxu0 }
  0xf7   :  { %v766_v50 = vadd.f32 %v765_v49, %v764_v48  ;;  %v767_v51 = vpop.f32.mrb[2].mxu0  ;;  %v846_v52 = vpop.f32.mrb[0].mxu1  ;;  %v26_v49 = vld [vmem:[%s1184_s2 + $0x38] sm:$0xff] }
  0xf8   :  { %v768_v53 = vpop.f32.mrb[3].mxu0  ;;  %v550_v55 = vpop.f32.mrb[1].mxu1 }
  0xf9   :  { %v769_v56 = vadd.f32 %v768_v53, %v767_v51  ;;  %v551_v57 = vadd.f32 %v766_v50, %v550_v55  ;;  %v847_v58 = vpop.f32.mrb[2].mxu1 }
  0xfa   :  { %v553_v60 = vpop.f32.mrb[3].mxu1 }
  0xfb   :  { %v613_v61 = vadd.f32 %v551_v57, %v19_v54  ;;  %v554_v62 = vadd.f32 %v769_v56, %v553_v60 }
  0xfd   :  { %v664_v63 = vmax.f32 %v613_v61, 0.0  ;;  %v614_v0 = vadd.f32 %v554_v62, %v20_v59  ;;  %v770_v1 = vpop.f32.mrb[4].mxu0  ;;  %v27_v61 = vld [vmem:[%s1184_s2 + $0x40] sm:$0xff] }
  0xfe   :  { %v771_v2 = vpop.f32.mrb[5].mxu0 }
  0xff   :  { %680 = vst [vmem:[%s1185_s3] sm:$0xff] %v664_v63  ;;  %v665_v3 = vmax.f32 %v614_v0, 0.0  ;;  %v772_v4 = vadd.f32 %v771_v2, %v770_v1  ;;  %v773_v5 = vpop.f32.mrb[6].mxu0  ;;  %v850_v6 = vpop.f32.mrb[4].mxu1  ;;  %v28_v0 = vld [vmem:[%s1184_s2 + $0x48] sm:$0xff] }
 0x100   :  { %v774_v8 = vpop.f32.mrb[7].mxu0  ;;  %v566_v9 = vpop.f32.mrb[5].mxu1 }
 0x101   :  { %681 = vst [vmem:[%s1185_s3 + $0x8] sm:$0xff] %v665_v3  ;;  %v559_v10 = vadd.f32 %v846_v52, %v772_v4  ;;  %v775_v11 = vadd.f32 %v774_v8, %v773_v5  ;;  %v851_v12 = vpop.f32.mrb[6].mxu1 }
 0x102   :  { %v569_v14 = vpop.f32.mrb[7].mxu1 }
 0x103   :  { %v615_v15 = vadd.f32 %v559_v10, %v21_v7  ;;  %v562_v16 = vadd.f32 %v847_v58, %v775_v11  ;;  %v29_v10 = vld [vmem:[%s1184_s2 + $0x50] sm:$0xff] }
 0x105   :  { %v666_v17 = vmax.f32 %v615_v15, 0.0  ;;  %v616_v18 = vadd.f32 %v562_v16, %v22_v13  ;;  %v776_v19 = vpop.f32.mrb[8].mxu0 }
 0x106   :  { %v777_v20 = vpop.f32.mrb[9].mxu0 }
 0x107   :  { %682 = vst [vmem:[%s1185_s3 + $0x10] sm:$0xff] %v666_v17  ;;  %v667_v21 = vmax.f32 %v616_v18, 0.0  ;;  %v778_v22 = vadd.f32 %v777_v20, %v776_v19  ;;  %v779_v23 = vpop.f32.mrb[10].mxu0  ;;  %v854_v24 = vpop.f32.mrb[8].mxu1 }
 0x108   :  { %v780_v25 = vpop.f32.mrb[11].mxu0  ;;  %v582_v27 = vpop.f32.mrb[9].mxu1 }
 0x109   :  { %683 = vst [vmem:[%s1185_s3 + $0x18] sm:$0xff] %v667_v21  ;;  %v781_v28 = vadd.f32 %v780_v25, %v779_v23  ;;  %v567_v29 = vadd.f32 %v778_v22, %v566_v9  ;;  %v855_v30 = vpop.f32.mrb[10].mxu1 }
 0x10a   :  { %v585_v32 = vpop.f32.mrb[11].mxu1 }
 0x10b   :  { %v617_v33 = vadd.f32 %v567_v29, %v23_v26  ;;  %v570_v34 = vadd.f32 %v781_v28, %v569_v14  ;;  %v30_v14 = vld [vmem:[%s1184_s2 + $0x58] sm:$0xff]  ;;  %v32_v28 = vld [vmem:[%s1184_s2 + $0x68] sm:$0xff] }
 0x10d   :  { %v668_v35 = vmax.f32 %v617_v33, 0.0  ;;  %v618_v36 = vadd.f32 %v570_v34, %v24_v31  ;;  %v782_v37 = vpop.f32.mrb[12].mxu0 }
 0x10e   :  { %v783_v38 = vpop.f32.mrb[13].mxu0 }
 0x10f   :  { %684 = vst [vmem:[%s1185_s3 + $0x20] sm:$0xff] %v668_v35  ;;  %v669_v39 = vmax.f32 %v618_v36, 0.0  ;;  %v784_v40 = vadd.f32 %v783_v38, %v782_v37  ;;  %v785_v41 = vpop.f32.mrb[14].mxu0  ;;  %v1113_v42 = vpop.f32.mrb[12].mxu1  ;;  %v33_v38 = vld [vmem:[%s1184_s2 + $0x70] sm:$0xff] }
 0x110   :  { %v786_v44 = vpop.f32.mrb[15].mxu0  ;;  %v598_v45 = vpop.f32.mrb[13].mxu1 }
 0x111   :  { %685 = vst [vmem:[%s1185_s3 + $0x28] sm:$0xff] %v669_v39  ;;  %v575_v46 = vadd.f32 %v850_v6, %v784_v40  ;;  %v787_v47 = vadd.f32 %v786_v44, %v785_v41  ;;  %v1121_v48 = vpop.f32.mrb[14].mxu1 }
 0x112   :  { %v601_v50 = vpop.f32.mrb[15].mxu1 }
 0x113   :  { %v619_v51 = vadd.f32 %v575_v46, %v25_v43  ;;  %v578_v52 = vadd.f32 %v851_v12, %v787_v47  ;;  %v34_v43 = vld [vmem:[%s1184_s2 + $0x78] sm:$0xff] }
 0x115   :  { %v670_v53 = vmax.f32 %v619_v51, 0.0  ;;  %v620_v54 = vadd.f32 %v578_v52, %v26_v49  ;;  %v788_v55 = vpop.f32.mrb[16].mxu0 }
 0x116   :  { %v789_v56 = vpop.f32.mrb[17].mxu0 }
 0x117   :  { %686 = vst [vmem:[%s1185_s3 + $0x30] sm:$0xff] %v670_v53  ;;  %v671_v57 = vmax.f32 %v620_v54, 0.0  ;;  %v790_v58 = vadd.f32 %v789_v56, %v788_v55  ;;  %v791_v59 = vpop.f32.mrb[18].mxu0 }
 0x118   :  { %v792_v60 = vpop.f32.mrb[19].mxu0 }
 0x119   :  { %687 = vst [vmem:[%s1185_s3 + $0x38] sm:$0xff] %v671_v57  ;;  %v793_v62 = vadd.f32 %v792_v60, %v791_v59  ;;  %v583_v63 = vadd.f32 %v790_v58, %v582_v27 }
 0x11b   :  { %v621_v1 = vadd.f32 %v583_v63, %v27_v61  ;;  %v586_v2 = vadd.f32 %v793_v62, %v585_v32 }
 0x11d   :  { %v672_v3 = vmax.f32 %v621_v1, 0.0  ;;  %v622_v4 = vadd.f32 %v586_v2, %v28_v0  ;;  %v794_v5 = vpop.f32.mrb[20].mxu0 }
 0x11e   :  { %v795_v6 = vpop.f32.mrb[21].mxu0 }
 0x11f   :  { %688 = vst [vmem:[%s1185_s3 + $0x40] sm:$0xff] %v672_v3  ;;  %v673_v7 = vmax.f32 %v622_v4, 0.0  ;;  %v796_v8 = vadd.f32 %v795_v6, %v794_v5  ;;  %v797_v9 = vpop.f32.mrb[22].mxu0 }
 0x120   :  { %v798_v11 = vpop.f32.mrb[23].mxu0 }
 0x121   :  { %689 = vst [vmem:[%s1185_s3 + $0x48] sm:$0xff] %v673_v7  ;;  %v591_v12 = vadd.f32 %v854_v24, %v796_v8  ;;  %v799_v13 = vadd.f32 %v798_v11, %v797_v9  ;;  %v31_v24 = vld [vmem:[%s1184_s2 + $0x60] sm:$0xff] }
 0x123   :  { %v623_v15 = vadd.f32 %v591_v12, %v29_v10  ;;  %v594_v16 = vadd.f32 %v855_v30, %v799_v13 }
 0x125   :  { %v674_v17 = vmax.f32 %v623_v15, 0.0  ;;  %v624_v18 = vadd.f32 %v594_v16, %v30_v14  ;;  %v800_v19 = vpop.f32.mrb[24].mxu0 }
 0x126   :  { %v801_v20 = vpop.f32.mrb[25].mxu0 }
 0x127   :  { %690 = vst [vmem:[%s1185_s3 + $0x50] sm:$0xff] %v674_v17  ;;  %v675_v21 = vmax.f32 %v624_v18, 0.0  ;;  %v802_v22 = vadd.f32 %v801_v20, %v800_v19  ;;  %v803_v23 = vpop.f32.mrb[26].mxu0 }
 0x128   :  { %v804_v25 = vpop.f32.mrb[27].mxu0 }
 0x129   :  { %691 = vst [vmem:[%s1185_s3 + $0x58] sm:$0xff] %v675_v21  ;;  %v805_v26 = vadd.f32 %v804_v25, %v803_v23  ;;  %v599_v27 = vadd.f32 %v802_v22, %v598_v45 }
 0x12b   :  { %v625_v29 = vadd.f32 %v599_v27, %v31_v24  ;;  %v602_v30 = vadd.f32 %v805_v26, %v601_v50 }
 0x12d   :  { %v676_v31 = vmax.f32 %v625_v29, 0.0  ;;  %v626_v32 = vadd.f32 %v602_v30, %v32_v28  ;;  %v806_v33 = vpop.f32.mrb[28].mxu0 }
 0x12e   :  { %v807_v34 = vpop.f32.mrb[29].mxu0 }
 0x12f   :  { %692 = vst [vmem:[%s1185_s3 + $0x60] sm:$0xff] %v676_v31  ;;  %v677_v35 = vmax.f32 %v626_v32, 0.0  ;;  %v808_v36 = vadd.f32 %v807_v34, %v806_v33  ;;  %v809_v37 = vpop.f32.mrb[30].mxu0 }
 0x130   :  { %v810_v39 = vpop.f32.mrb[31].mxu0 }
 0x131   :  { %693 = vst [vmem:[%s1185_s3 + $0x68] sm:$0xff] %v677_v35  ;;  %v607_v40 = vadd.f32 %v1113_v42, %v808_v36  ;;  %v811_v41 = vadd.f32 %v810_v39, %v809_v37 }
 0x133   :  { %v627_v44 = vadd.f32 %v607_v40, %v33_v38  ;;  %v610_v45 = vadd.f32 %v1121_v48, %v811_v41 }
 0x135   :  { %v678_v46 = vmax.f32 %v627_v44, 0.0  ;;  %v628_v47 = vadd.f32 %v610_v45, %v34_v43 }
 0x137   :  { %694 = vst [vmem:[%s1185_s3 + $0x70] sm:$0xff] %v678_v46  ;;  %v679_v49 = vmax.f32 %v628_v47, 0.0 }
 0x139   :  { %695 = vst [vmem:[%s1185_s3 + $0x78] sm:$0xff] %v679_v49 }

// kernel: heterosage_forward.7
= control target key start
LH: loop header
LB: loop body
LE: loop exit
PB: predicated region body
PF: predicated region fallthrough
CT: control target
= control target key end

     0   :  { %s1125_s1 = inlined_call_operand.vmem [shape: bf16[384,128], index: 1, kind: input, shape index: {}]   ;;  %s1126_s0 = inlined_call_operand.vmem [shape: bf16[128,384], index: 0, kind: input, shape index: {}]   ;;  %s1127_s2 = inlined_call_operand.vmem [shape: f32[128,128], index: 2, kind: input, shape index: {}]   ;;  %s1128_s3 = inlined_call_operand.vmem [shape: f32[128,128], index: 3, kind: output, shape index: {}]  }
   0x1   :  { %v809_v0 = vld [vmem:[%s1125_s1 + $0x40] sm:$0xff]   ;;  %v812_v3 = vld [vmem:[%s1125_s1 + $0x48] sm:$0xff]   ;;  %v815_v6 = vld [vmem:[%s1125_s1 + $0x50] sm:$0xff]  }
   0x2   :  { %v810_v1 = vld [vmem:[%s1125_s1] sm:$0xff]   ;;  %697 = vmatprep.subr.bf16.mxu0 %v809_v0  ;;  %v813_v4 = vld [vmem:[%s1125_s1 + $0x8] sm:$0xff]   ;;  %v816_v7 = vld [vmem:[%s1125_s1 + $0x10] sm:$0xff]  }
   0x3   :  { %v811_v2 = vld [vmem:[%s1125_s1 + $0x80] sm:$0xff]   ;;  %698 = vmatpush3.bf16.msra.mxu0 %v810_v1  ;;  %v814_v5 = vld [vmem:[%s1125_s1 + $0x88] sm:$0xff]   ;;  %v817_v8 = vld [vmem:[%s1125_s1 + $0x90] sm:$0xff]  }
   0x4   :  { %777 = vmatprep.subr.bf16.mxu1 %v811_v2  ;;  %699 = vmatprep.subr.bf16.mxu0 %v812_v3  ;;  %v818_v9 = vld [vmem:[%s1125_s1 + $0x58] sm:$0xff]   ;;  %v821_v12 = vld [vmem:[%s1125_s1 + $0x60] sm:$0xff]   ;;  %v824_v15 = vld [vmem:[%s1125_s1 + $0x68] sm:$0xff]  }
   0x5   :  { %778 = vmatpush3.bf16.msra.mxu1 %v811_v2  ;;  %v819_v10 = vld [vmem:[%s1125_s1 + $0x18] sm:$0xff]   ;;  %v823_v13 = vld [vmem:[%s1125_s1 + $0xa0] sm:$0xff]   ;;  %v826_v16 = vld [vmem:[%s1125_s1 + $0xa8] sm:$0xff]  }
   0x6   :  { %779 = vmatprep.subr.bf16.mxu1 %v814_v5  ;;  %v820_v11 = vld [vmem:[%s1125_s1 + $0x98] sm:$0xff]   ;;  %v822_v14 = vld [vmem:[%s1125_s1 + $0x20] sm:$0xff]   ;;  %v825_v17 = vld [vmem:[%s1125_s1 + $0x28] sm:$0xff]  }
   0x7   :  { %700 = vmatpush3.bf16.msra.mxu0 %v813_v4  ;;  %v827_v18 = vld [vmem:[%s1125_s1 + $0x70] sm:$0xff]   ;;  %v830_v21 = vld [vmem:[%s1125_s1 + $0x78] sm:$0xff]   ;;  %v833_v26 = vld [vmem:[%s1126_s0] ss:$12 sps:$4 sm:$0xff]  }
   0x8   :  { %701 = vmatprep.subr.bf16.mxu0 %v815_v6  ;;  %v828_v19 = vld [vmem:[%s1125_s1 + $0x30] sm:$0xff]   ;;  %v832_v22 = vld [vmem:[%s1125_s1 + $0xb8] sm:$0xff]   ;;  %v837_v28 = vld [vmem:[%s1126_s0 + $0x20] ss:$12 sps:$4 sm:$0xff]  }
   0x9   :  { %780 = vmatpush3.bf16.msra.mxu1 %v814_v5  ;;  %v829_v20 = vld [vmem:[%s1125_s1 + $0xb0] sm:$0xff]   ;;  %v831_v25 = vld [vmem:[%s1125_s1 + $0x38] sm:$0xff]   ;;  %v853_v36 = vld [vmem:[%s1126_s0 + $0x80] ss:$12 sps:$4 sm:$0xff]  }
   0xa   :  { %781 = vmatprep.subr.bf16.mxu1 %v817_v8  ;;  %v835_v23 = vld [vmem:[%s1126_s0 + $0x4] ss:$12 sps:$4 sm:$0xff]   ;;  %v836_v24 = vld [vmem:[%s1126_s0 + $0x8] ss:$12 sps:$4 sm:$0xff]   ;;  %v846_v35 = vld [vmem:[%s1126_s0 + $0x4c] ss:$12 sps:$4 sm:$0xff]  }
   0xb   :  { %702 = vmatpush3.bf16.msra.mxu0 %v816_v7  ;;  %451 = vmatprep.mubr.bf16.mxu0 %v835_v23  ;;  %v838_v27 = vld [vmem:[%s1126_s0 + $0x1c] ss:$12 sps:$4 sm:$0xff]   ;;  %v844_v29 = vld [vmem:[%s1126_s0 + $0x38] ss:$12 sps:$4 sm:$0xff]   ;;  %v841_v31 = vld [vmem:[%s1126_s0 + $0x34] ss:$12 sps:$4 sm:$0xff]  }
   0xc   :  { %703 = vmatprep.subr.bf16.mxu0 %v818_v9  ;;  %793 = vmatprep.mubr.bf16.mxu1 %v836_v24  ;;  %v840_v30 = vld [vmem:[%s1126_s0 + $0x18] ss:$12 sps:$4 sm:$0xff]   ;;  %v845_v32 = vld [vmem:[%s1126_s0 + $0x50] ss:$12 sps:$4 sm:$0xff]   ;;  %v852_v33 = vld [vmem:[%s1126_s0 + $0x68] ss:$12 sps:$4 sm:$0xff]  }
   0xd   :  { %782 = vmatpush3.bf16.msra.mxu1 %v817_v8  ;;  %v843_v34 = vld [vmem:[%s1126_s0 + $0x30] ss:$12 sps:$4 sm:$0xff]   ;;  %v860_v37 = vld [vmem:[%s1126_s0 + $0x98] ss:$12 sps:$4 sm:$0xff]   ;;  %v848_v38 = vld [vmem:[%s1126_s0 + $0x48] ss:$12 sps:$4 sm:$0xff]  }
   0xe   :  { %783 = vmatprep.subr.bf16.mxu1 %v820_v11  ;;  %v849_v39 = vld [vmem:[%s1126_s0 + $0x64] ss:$12 sps:$4 sm:$0xff]   ;;  %v851_v41 = vld [vmem:[%s1126_s0 + $0x60] ss:$12 sps:$4 sm:$0xff]   ;;  %v854_v42 = vld [vmem:[%s1126_s0 + $0x7c] ss:$12 sps:$4 sm:$0xff]  }
   0xf   :  { %704 = vmatpush3.bf16.msra.mxu0 %v819_v10  ;;  %v861_v40 = vld [vmem:[%s1126_s0 + $0xb0] ss:$12 sps:$4 sm:$0xff]   ;;  %v856_v43 = vld [vmem:[%s1126_s0 + $0x78] ss:$12 sps:$4 sm:$0xff]   ;;  %v857_v44 = vld [vmem:[%s1126_s0 + $0x94] ss:$12 sps:$4 sm:$0xff]  }
  0x10   :  { %705 = vmatprep.subr.bf16.mxu0 %v821_v12  ;;  %v859_v45 = vld [vmem:[%s1126_s0 + $0x90] ss:$12 sps:$4 sm:$0xff]   ;;  %v862_v46 = vld [vmem:[%s1126_s0 + $0xac] ss:$12 sps:$4 sm:$0xff]   ;;  %v864_v47 = vld [vmem:[%s1126_s0 + $0xa8] ss:$12 sps:$4 sm:$0xff]  }
  0x11   :  { %784 = vmatpush3.bf16.msra.mxu1 %v820_v11  ;;  %v19_v54 = vld [vmem:[%s1127_s2] sm:$0xff]  ;;  %v20_v59 = vld [vmem:[%s1127_s2 + $0x8] sm:$0xff]  ;;  %v21_v5 = vld [vmem:[%s1127_s2 + $0x10] sm:$0xff] }
  0x12   :  { %785 = vmatprep.subr.bf16.mxu1 %v823_v13  ;;  %v22_v11 = vld [vmem:[%s1127_s2 + $0x18] sm:$0xff] }
  0x13   :  { %706 = vmatpush3.bf16.msra.mxu0 %v822_v14 }
  0x14   :  { %707 = vmatprep.subr.bf16.mxu0 %v824_v15 }
  0x15   :  { %786 = vmatpush3.bf16.msra.mxu1 %v823_v13 }
  0x16   :  { %787 = vmatprep.subr.bf16.mxu1 %v826_v16 }
  0x17   :  { %708 = vmatpush3.bf16.msra.mxu0 %v825_v17 }
  0x18   :  { %709 = vmatprep.subr.bf16.mxu0 %v827_v18 }
  0x19   :  { %788 = vmatpush3.bf16.msra.mxu1 %v826_v16 }
  0x1a   :  { %789 = vmatprep.subr.bf16.mxu1 %v829_v20 }
  0x1b   :  { %710 = vmatpush3.bf16.msra.mxu0 %v828_v19 }
  0x1c   :  { %711 = vmatprep.subr.bf16.mxu0 %v830_v21 }
  0x1d   :  { %790 = vmatpush3.bf16.msra.mxu1 %v829_v20 }
  0x1e   :  { %791 = vmatprep.subr.bf16.mxu1 %v832_v22 }
  0x1f   :  { %712 = vmatpush3.bf16.msra.mxu0 %v831_v25 }
  0x21   :  { %792 = vmatpush3.bf16.msra.mxu1 %v832_v22  ;;  %v23_v22 = vld [vmem:[%s1127_s2 + $0x20] sm:$0xff] }
  0x22   :  { %452 = vmatmul.mubr.bf16.vlgmr.msra.gmra.mrb[0].mxu0 %v833_v26 }
  0x23   :  { %459 = vmatprep.mubr.bf16.mxu0 %v838_v27  ;;  %v24_v27 = vld [vmem:[%s1127_s2 + $0x28] sm:$0xff] }
  0x24   :  { %794 = vmatmul.mubr.bf16.vlgmr.msra.gmra.mrb[0].mxu1 %v837_v28 }
  0x25   :  { %797 = vmatprep.mubr.bf16.mxu1 %v844_v29 }
  0x2a   :  { %460 = vmatmul.mubr.bf16.gmra.mrb[4].mxu0 %v840_v30 }
  0x2b   :  { %467 = vmatprep.mubr.bf16.mxu0 %v841_v31 }
  0x2c   :  { %798 = vmatmul.mubr.bf16.gmra.mrb[4].mxu1 %v845_v32 }
  0x2d   :  { %801 = vmatprep.mubr.bf16.mxu1 %v852_v33 }
  0x32   :  { %468 = vmatmul.mubr.bf16.gmra.mrb[8].mxu0 %v843_v34 }
  0x33   :  { %475 = vmatprep.mubr.bf16.mxu0 %v846_v35 }
  0x34   :  { %802 = vmatmul.mubr.bf16.gmra.mrb[8].mxu1 %v853_v36 }
  0x35   :  { %805 = vmatprep.mubr.bf16.mxu1 %v860_v37  ;;  %v25_v37 = vld [vmem:[%s1127_s2 + $0x30] sm:$0xff] }
  0x3a   :  { %476 = vmatmul.mubr.bf16.gmra.mrb[12].mxu0 %v848_v38 }
  0x3b   :  { %483 = vmatprep.mubr.bf16.mxu0 %v849_v39 }
  0x3c   :  { %806 = vmatmul.mubr.bf16.gmra.mrb[12].mxu1 %v861_v40 }
  0x42   :  { %484 = vmatmul.mubr.bf16.gmra.mrb[16].mxu0 %v851_v41 }
  0x43   :  { %491 = vmatprep.mubr.bf16.mxu0 %v854_v42 }
  0x4a   :  { %492 = vmatmul.mubr.bf16.gmra.mrb[20].mxu0 %v856_v43  ;;  %v26_v43 = vld [vmem:[%s1127_s2 + $0x38] sm:$0xff] }
  0x4b   :  { %499 = vmatprep.mubr.bf16.mxu0 %v857_v44 }
  0x52   :  { %500 = vmatmul.mubr.bf16.gmra.mrb[24].mxu0 %v859_v45 }
  0x53   :  { %507 = vmatprep.mubr.bf16.mxu0 %v862_v46 }
  0x5a   :  { %508 = vmatmul.mubr.bf16.gmra.mrb[28].mxu0 %v864_v47 }
  0xf5   :  { %v713_v48 = vpop.f32.mrb[0].mxu0 }
  0xf6   :  { %v714_v49 = vpop.f32.mrb[1].mxu0 }
  0xf7   :  { %v715_v50 = vadd.f32 %v714_v49, %v713_v48  ;;  %v716_v51 = vpop.f32.mrb[2].mxu0  ;;  %v795_v52 = vpop.f32.mrb[0].mxu1 }
  0xf8   :  { %v717_v53 = vpop.f32.mrb[3].mxu0  ;;  %v550_v55 = vpop.f32.mrb[1].mxu1 }
  0xf9   :  { %v718_v56 = vadd.f32 %v717_v53, %v716_v51  ;;  %v551_v57 = vadd.f32 %v715_v50, %v550_v55  ;;  %v796_v58 = vpop.f32.mrb[2].mxu1  ;;  %v27_v53 = vld [vmem:[%s1127_s2 + $0x40] sm:$0xff] }
  0xfa   :  { %v553_v60 = vpop.f32.mrb[3].mxu1 }
  0xfb   :  { %v613_v61 = vadd.f32 %v551_v57, %v19_v54  ;;  %v554_v62 = vadd.f32 %v718_v56, %v553_v60  ;;  %v28_v56 = vld [vmem:[%s1127_s2 + $0x48] sm:$0xff] }
  0xfd   :  { %629 = vst [vmem:[%s1128_s3] sm:$0xff] %v613_v61  ;;  %v614_v63 = vadd.f32 %v554_v62, %v20_v59  ;;  %v719_v0 = vpop.f32.mrb[4].mxu0 }
  0xfe   :  { %v720_v1 = vpop.f32.mrb[5].mxu0 }
  0xff   :  { %630 = vst [vmem:[%s1128_s3 + $0x8] sm:$0xff] %v614_v63  ;;  %v721_v2 = vadd.f32 %v720_v1, %v719_v0  ;;  %v722_v3 = vpop.f32.mrb[6].mxu0  ;;  %v799_v4 = vpop.f32.mrb[4].mxu1  ;;  %v29_v0 = vld [vmem:[%s1127_s2 + $0x50] sm:$0xff] }
 0x100   :  { %v723_v6 = vpop.f32.mrb[7].mxu0  ;;  %v566_v7 = vpop.f32.mrb[5].mxu1 }
 0x101   :  { %v559_v8 = vadd.f32 %v795_v52, %v721_v2  ;;  %v724_v9 = vadd.f32 %v723_v6, %v722_v3  ;;  %v800_v10 = vpop.f32.mrb[6].mxu1 }
 0x102   :  { %v569_v12 = vpop.f32.mrb[7].mxu1 }
 0x103   :  { %v615_v13 = vadd.f32 %v559_v8, %v21_v5  ;;  %v562_v14 = vadd.f32 %v796_v58, %v724_v9 }
 0x105   :  { %631 = vst [vmem:[%s1128_s3 + $0x10] sm:$0xff] %v615_v13  ;;  %v616_v15 = vadd.f32 %v562_v14, %v22_v11  ;;  %v725_v16 = vpop.f32.mrb[8].mxu0  ;;  %v31_v13 = vld [vmem:[%s1127_s2 + $0x60] sm:$0xff] }
 0x106   :  { %v726_v17 = vpop.f32.mrb[9].mxu0 }
 0x107   :  { %632 = vst [vmem:[%s1128_s3 + $0x18] sm:$0xff] %v616_v15  ;;  %v727_v18 = vadd.f32 %v726_v17, %v725_v16  ;;  %v728_v19 = vpop.f32.mrb[10].mxu0  ;;  %v803_v20 = vpop.f32.mrb[8].mxu1  ;;  %v32_v16 = vld [vmem:[%s1127_s2 + $0x68] sm:$0xff] }
 0x108   :  { %v729_v21 = vpop.f32.mrb[11].mxu0  ;;  %v582_v23 = vpop.f32.mrb[9].mxu1 }
 0x109   :  { %v730_v24 = vadd.f32 %v729_v21, %v728_v19  ;;  %v567_v25 = vadd.f32 %v727_v18, %v566_v7  ;;  %v804_v26 = vpop.f32.mrb[10].mxu1 }
 0x10a   :  { %v585_v28 = vpop.f32.mrb[11].mxu1 }
 0x10b   :  { %v617_v29 = vadd.f32 %v567_v25, %v23_v22  ;;  %v570_v30 = vadd.f32 %v730_v24, %v569_v12  ;;  %v33_v24 = vld [vmem:[%s1127_s2 + $0x70] sm:$0xff] }
 0x10d   :  { %633 = vst [vmem:[%s1128_s3 + $0x20] sm:$0xff] %v617_v29  ;;  %v618_v31 = vadd.f32 %v570_v30, %v24_v27  ;;  %v731_v32 = vpop.f32.mrb[12].mxu0 }
 0x10e   :  { %v732_v33 = vpop.f32.mrb[13].mxu0 }
 0x10f   :  { %634 = vst [vmem:[%s1128_s3 + $0x28] sm:$0xff] %v618_v31  ;;  %v733_v34 = vadd.f32 %v732_v33, %v731_v32  ;;  %v734_v35 = vpop.f32.mrb[14].mxu0  ;;  %v807_v36 = vpop.f32.mrb[12].mxu1 }
 0x110   :  { %v735_v38 = vpop.f32.mrb[15].mxu0  ;;  %v598_v39 = vpop.f32.mrb[13].mxu1 }
 0x111   :  { %v575_v40 = vadd.f32 %v799_v4, %v733_v34  ;;  %v736_v41 = vadd.f32 %v735_v38, %v734_v35  ;;  %v808_v42 = vpop.f32.mrb[14].mxu1  ;;  %v30_v4 = vld [vmem:[%s1127_s2 + $0x58] sm:$0xff] }
 0x112   :  { %v601_v44 = vpop.f32.mrb[15].mxu1 }
 0x113   :  { %v619_v45 = vadd.f32 %v575_v40, %v25_v37  ;;  %v578_v46 = vadd.f32 %v800_v10, %v736_v41 }
 0x115   :  { %635 = vst [vmem:[%s1128_s3 + $0x30] sm:$0xff] %v619_v45  ;;  %v620_v47 = vadd.f32 %v578_v46, %v26_v43  ;;  %v737_v48 = vpop.f32.mrb[16].mxu0 }
 0x116   :  { %v738_v49 = vpop.f32.mrb[17].mxu0 }
 0x117   :  { %636 = vst [vmem:[%s1128_s3 + $0x38] sm:$0xff] %v620_v47  ;;  %v739_v50 = vadd.f32 %v738_v49, %v737_v48  ;;  %v740_v51 = vpop.f32.mrb[18].mxu0 }
 0x118   :  { %v741_v52 = vpop.f32.mrb[19].mxu0 }
 0x119   :  { %v742_v54 = vadd.f32 %v741_v52, %v740_v51  ;;  %v583_v55 = vadd.f32 %v739_v50, %v582_v23 }
 0x11b   :  { %v621_v57 = vadd.f32 %v583_v55, %v27_v53  ;;  %v586_v58 = vadd.f32 %v742_v54, %v585_v28  ;;  %v34_v28 = vld [vmem:[%s1127_s2 + $0x78] sm:$0xff] }
 0x11d   :  { %637 = vst [vmem:[%s1128_s3 + $0x40] sm:$0xff] %v621_v57  ;;  %v622_v59 = vadd.f32 %v586_v58, %v28_v56  ;;  %v743_v60 = vpop.f32.mrb[20].mxu0 }
 0x11e   :  { %v744_v61 = vpop.f32.mrb[21].mxu0 }
 0x11f   :  { %638 = vst [vmem:[%s1128_s3 + $0x48] sm:$0xff] %v622_v59  ;;  %v745_v62 = vadd.f32 %v744_v61, %v743_v60  ;;  %v746_v63 = vpop.f32.mrb[22].mxu0 }
 0x120   :  { %v747_v1 = vpop.f32.mrb[23].mxu0 }
 0x121   :  { %v591_v2 = vadd.f32 %v803_v20, %v745_v62  ;;  %v748_v3 = vadd.f32 %v747_v1, %v746_v63 }
 0x123   :  { %v623_v5 = vadd.f32 %v591_v2, %v29_v0  ;;  %v594_v6 = vadd.f32 %v804_v26, %v748_v3 }
 0x125   :  { %639 = vst [vmem:[%s1128_s3 + $0x50] sm:$0xff] %v623_v5  ;;  %v624_v7 = vadd.f32 %v594_v6, %v30_v4  ;;  %v749_v8 = vpop.f32.mrb[24].mxu0 }
 0x126   :  { %v750_v9 = vpop.f32.mrb[25].mxu0 }
 0x127   :  { %640 = vst [vmem:[%s1128_s3 + $0x58] sm:$0xff] %v624_v7  ;;  %v751_v10 = vadd.f32 %v750_v9, %v749_v8  ;;  %v752_v11 = vpop.f32.mrb[26].mxu0 }
 0x128   :  { %v753_v12 = vpop.f32.mrb[27].mxu0 }
 0x129   :  { %v754_v14 = vadd.f32 %v753_v12, %v752_v11  ;;  %v599_v15 = vadd.f32 %v751_v10, %v598_v39 }
 0x12b   :  { %v625_v17 = vadd.f32 %v599_v15, %v31_v13  ;;  %v602_v18 = vadd.f32 %v754_v14, %v601_v44 }
 0x12d   :  { %641 = vst [vmem:[%s1128_s3 + $0x60] sm:$0xff] %v625_v17  ;;  %v626_v19 = vadd.f32 %v602_v18, %v32_v16  ;;  %v755_v20 = vpop.f32.mrb[28].mxu0 }
 0x12e   :  { %v756_v21 = vpop.f32.mrb[29].mxu0 }
 0x12f   :  { %642 = vst [vmem:[%s1128_s3 + $0x68] sm:$0xff] %v626_v19  ;;  %v757_v22 = vadd.f32 %v756_v21, %v755_v20  ;;  %v758_v23 = vpop.f32.mrb[30].mxu0 }
 0x130   :  { %v759_v25 = vpop.f32.mrb[31].mxu0 }
 0x131   :  { %v607_v26 = vadd.f32 %v807_v36, %v757_v22  ;;  %v760_v27 = vadd.f32 %v759_v25, %v758_v23 }
 0x133   :  { %v627_v29 = vadd.f32 %v607_v26, %v33_v24  ;;  %v610_v30 = vadd.f32 %v808_v42, %v760_v27 }
 0x135   :  { %643 = vst [vmem:[%s1128_s3 + $0x70] sm:$0xff] %v627_v29  ;;  %v628_v31 = vadd.f32 %v610_v30, %v34_v28 }
 0x137   :  { %644 = vst [vmem:[%s1128_s3 + $0x78] sm:$0xff] %v628_v31 }

</bundles_post_ra>
